<compile_context>
chip_gen: v5e
topology: v5e:2x2
jax: 0.10.0
libtpu: 0.0.40
codegen_flags: <defaults>
</compile_context>

<pallas_src>
import functools
import math

import jax
import jax.numpy as jnp
from jax.experimental import pallas as pl
from jax.experimental.pallas import tpu as pltpu

LANE = 128
SUBLANE = 8


def _round_up(x, m):
    return (x + m - 1) // m * m


def _vmem_capacity_bytes():
    try:
        return int(pltpu.get_tpu_info().vmem_capacity_bytes)
    except Exception:
        return 64 << 20  # conservative default (v7x per-TC VMEM)


# ---------------------------------------------------------------------------
# Param packing (done ONCE, outside the forward path)
# ---------------------------------------------------------------------------
def prepare_params(params):
    """params: list of (W:(in,out) f32, b:(out,) f32).  Pads to 128 lanes and
    casts weights to bf16 once so the forward pass does no repacking."""
    dims = [params[0][0].shape[0]] + [w.shape[1] for (w, _) in params]
    dims_p = [_round_up(d, LANE) for d in dims]
    weights, biases = [], []
    for li, (w, b) in enumerate(params):
        n_in, n_out = w.shape
        w_p = jnp.zeros((dims_p[li], dims_p[li + 1]), jnp.bfloat16)
        w_p = w_p.at[:n_in, :n_out].set(w.astype(jnp.bfloat16))
        b_p = jnp.zeros((1, dims_p[li + 1]), jnp.float32)
        b_p = b_p.at[0, :n_out].set(b.astype(jnp.float32))
        weights.append(w_p)
        biases.append(b_p)
    return {"weights": weights, "biases": biases, "dims": dims, "dims_p": dims_p}


# ---------------------------------------------------------------------------
# Fused (all layers resident) kernel
# ---------------------------------------------------------------------------
def _fused_mlp_kernel(x_ref, *refs, num_layers):
    """refs = (w0, b0, w1, b1, ..., o_ref). One row tile, all layers fused."""
    o_ref = refs[-1]
    wb = refs[:-1]
    h = x_ref[...].astype(jnp.bfloat16)          # bf16 activations between layers
    for i in range(num_layers):
        w = wb[2 * i][...]                       # (d_prev_p, d_next_p) bf16, resident
        b = wb[2 * i + 1][...]                   # (1, d_next_p) f32
        y = jnp.dot(h, w, preferred_element_type=jnp.float32)   # MXU, f32 accum
        y = y + b                                # f32 epilogue on the VPU
        if i < num_layers - 1:
            h = jnp.maximum(y, 0.0).astype(jnp.bfloat16)
        else:
            h = y
    o_ref[...] = h.astype(o_ref.dtype)


def _call_fused(x_p, weights, biases, dims_p, tm, n_row_tiles, out_dtype,
                vmem_limit, single_buffer_weights, x_buffers):
    num_layers = len(weights)
    rows_p = x_p.shape[0]

    x_kwargs = {}
    if x_buffers != 2:
        x_kwargs["pipeline_mode"] = pl.Buffered(x_buffers)
    w_kwargs = {}
    if single_buffer_weights:
        # Constant-index blocks: one buffer is enough; halves resident VMEM.
        w_kwargs["pipeline_mode"] = pl.Buffered(1)

    in_specs = [pl.BlockSpec((tm, dims_p[0]), lambda i: (i, 0), **x_kwargs)]
    operands = [x_p]
    for li in range(num_layers):
        in_specs.append(pl.BlockSpec((dims_p[li], dims_p[li + 1]),
                                     lambda i: (0, 0), **w_kwargs))
        in_specs.append(pl.BlockSpec((1, dims_p[li + 1]),
                                     lambda i: (0, 0), **w_kwargs))
        operands += [weights[li], biases[li]]
    out_spec = pl.BlockSpec((tm, dims_p[-1]), lambda i: (i, 0))

    kernel = functools.partial(_fused_mlp_kernel, num_layers=num_layers)
    return pl.pallas_call(
        kernel,
        out_shape=jax.ShapeDtypeStruct((rows_p, dims_p[-1]), out_dtype),
        grid=(n_row_tiles,),
        in_specs=in_specs,
        out_specs=out_spec,
        compiler_params=pltpu.CompilerParams(
            dimension_semantics=("parallel",),   # split row tiles over the TCs
            vmem_limit_bytes=vmem_limit,
        ),
    )(*operands)


# ---------------------------------------------------------------------------
# Fallback: per-layer weight-streaming tiled matmul (+bias, +ReLU)
# ---------------------------------------------------------------------------
def _linear_kernel(x_ref, w_ref, b_ref, o_ref, acc_ref, *, apply_relu):
    @pl.when(pl.program_id(2) == 0)
    def _():
        acc_ref[...] = jnp.zeros_like(acc_ref)

    acc_ref[...] += jnp.dot(x_ref[...].astype(jnp.bfloat16), w_ref[...],
                            preferred_element_type=jnp.float32)

    @pl.when(pl.program_id(2) == pl.num_programs(2) - 1)
    def _():
        y = acc_ref[...] + b_ref[...]
        if apply_relu:
            y = jnp.maximum(y, 0.0)
        o_ref[...] = y.astype(o_ref.dtype)


def _pick_feature_tile(dim_p, cap=512):
    t = min(dim_p, cap)
    while dim_p % t:       # dim_p is a multiple of 128, so this terminates at 128
        t -= LANE
    return t


def _call_streaming(x_p, weights, biases, dims_p, tm, n_row_tiles, out_dtype,
                    vmem_cap):
    num_layers = len(weights)
    budget = int(0.75 * vmem_cap)
    h = x_p
    for li in range(num_layers):
        d_in_p, d_out_p = dims_p[li], dims_p[li + 1]
        tk = _pick_feature_tile(d_in_p)
        tn = _pick_feature_tile(d_out_p)
        apply_relu = li < num_layers - 1
        layer_dtype = jnp.bfloat16 if apply_relu else out_dtype
        tile_bytes = (2 * tm * tk * h.dtype.itemsize
                      + 2 * tk * tn * 2
                      + 2 * tn * 4
                      + 2 * tm * tn * jnp.dtype(layer_dtype).itemsize
                      + tm * tn * 4)
        vmem_limit = min(max(tile_bytes + (2 << 20), 16 << 20), budget)
        h = pl.pallas_call(
            functools.partial(_linear_kernel, apply_relu=apply_relu),
            out_shape=jax.ShapeDtypeStruct((h.shape[0], d_out_p), layer_dtype),
            grid=(n_row_tiles, d_out_p // tn, d_in_p // tk),
            in_specs=[pl.BlockSpec((tm, tk), lambda i, j, k: (i, k)),
                      pl.BlockSpec((tk, tn), lambda i, j, k: (k, j)),
                      pl.BlockSpec((1, tn), lambda i, j, k: (0, j))],
            out_specs=pl.BlockSpec((tm, tn), lambda i, j, k: (i, j)),
            scratch_shapes=[pltpu.VMEM((tm, tn), jnp.float32)],
            compiler_params=pltpu.CompilerParams(
                dimension_semantics=("parallel", "parallel", "arbitrary"),
                vmem_limit_bytes=vmem_limit),
        )(h, weights[li], biases[li])
    return h


# ---------------------------------------------------------------------------
# Forward wrapper
# ---------------------------------------------------------------------------
def mlp_forward(packed, x, *, row_tile=512, out_dtype=None, x_buffers=2,
                force_fallback=False):
    """packed: output of prepare_params().  x: [..., input_dim]."""
    dims, dims_p = packed["dims"], packed["dims_p"]
    weights, biases = packed["weights"], packed["biases"]
    num_layers = len(weights)
    d_in, d_out = dims[0], dims[-1]
    out_dtype = x.dtype if out_dtype is None else out_dtype

    lead_shape = x.shape[:-1]
    x2d = x.reshape(-1, d_in)
    rows = x2d.shape[0]

    # ---- row tiling: balance tiles to minimise dead-row padding ----
    rows_p8 = _round_up(max(rows, 1), SUBLANE)
    if rows_p8 <= row_tile:
        tm = rows_p8
    elif rows_p8 % row_tile == 0:
        tm = row_tile
    else:
        n = pl.cdiv(rows_p8, row_tile)
        tm = _round_up(pl.cdiv(rows_p8, n), SUBLANE)
    n_row_tiles = pl.cdiv(rows_p8, tm)
    rows_p = n_row_tiles * tm

    # ---- pad x only if needed (avoids a second HBM copy of the input) ----
    if rows_p == rows and dims_p[0] == d_in:
        x_p = x2d
    else:
        x_p = jnp.zeros((rows_p, dims_p[0]), x.dtype).at[:rows, :d_in].set(x2d)

    # ---- generation-aware VMEM planning ----
    vmem_cap = _vmem_capacity_bytes()
    budget = int(0.75 * vmem_cap)             # ~48 MiB on v7x, ~96 MiB on v5e/v6e
    weight_bytes = sum(int(a.size) * a.dtype.itemsize for a in weights)
    bias_bytes = sum(int(a.size) * a.dtype.itemsize for a in biases)
    x_tile_bytes = x_buffers * tm * dims_p[0] * x_p.dtype.itemsize
    out_tile_bytes = 2 * tm * dims_p[-1] * jnp.dtype(out_dtype).itemsize
    act_bytes = tm * max(dims_p) * (4 + 2)    # f32 accum + bf16 copy working set
    headroom = 2 << 20

    def _need(n_weight_buffers):
        return (n_weight_buffers * (weight_bytes + bias_bytes)
                + x_tile_bytes + out_tile_bytes + act_bytes + headroom)

    need1, need2 = _need(1), _need(2)
    fits1, fits2 = need1 <= budget, need2 <= budget

    if force_fallback or not fits1:
        # Resident plan cannot fit this generation's VMEM -> stream weights.
        out_p = _call_streaming(x_p, weights, biases, dims_p, tm, n_row_tiles,
                                out_dtype, vmem_cap)
    else:
        try:
            out_p = jax.block_until_ready(_call_fused(
                x_p, weights, biases, dims_p, tm, n_row_tiles, out_dtype,
                vmem_limit=min(max(need1, 16 << 20), budget),
                single_buffer_weights=True, x_buffers=x_buffers))
        except Exception:
            # pipeline_mode=Buffered(1) unsupported/ignored on this jax build:
            # retry with default double-buffered weights if they still fit,
            # otherwise stream the weights.
            if fits2:
                out_p = _call_fused(
                    x_p, weights, biases, dims_p, tm, n_row_tiles, out_dtype,
                    vmem_limit=min(max(need2, 16 << 20), budget),
                    single_buffer_weights=False, x_buffers=2)
            else:
                out_p = _call_streaming(x_p, weights, biases, dims_p, tm,
                                        n_row_tiles, out_dtype, vmem_cap)

    if out_p.shape[0] != rows or out_p.shape[1] != d_out:
        out_p = out_p[:rows, :d_out]
    return out_p.reshape(*lead_shape, d_out)


# ---------------------------------------------------------------------------
# Param init + references
# ---------------------------------------------------------------------------
def init_mlp_params(key, input_dim, hidden_dim, output_dim, num_layers):
    """Matches PyTorch MLP.__init__ layer shapes; PyTorch-style uniform init."""
    h = [hidden_dim] * (num_layers - 1)
    dims = list(zip([input_dim] + h, h + [output_dim]))
    params = []
    for (n_in, n_out) in dims:
        key, kw, kb = jax.random.split(key, 3)
        bound = 1.0 / math.sqrt(n_in)
        w = jax.random.uniform(kw, (n_in, n_out), jnp.float32, -bound, bound)
        b = jax.random.uniform(kb, (n_out,), jnp.float32, -bound, bound)
        params.append((w, b))
    return params


def mlp_reference_bf16(params, x):
    """Mirrors the kernel recipe: bf16 matmul inputs, f32 accum + epilogue."""
    num_layers = len(params)
    h = x.astype(jnp.float32)
    for i, (w, b) in enumerate(params):
        y = jnp.dot(h.astype(jnp.bfloat16), w.astype(jnp.bfloat16),
                    preferred_element_type=jnp.float32) + b
        h = jnp.maximum(y, 0.0) if i < num_layers - 1 else y
    return h


def mlp_reference_f32(params, x):
    num_layers = len(params)
    h = x
    for i, (w, b) in enumerate(params):
        h = h @ w + b
        if i < num_layers - 1:
            h = jnp.maximum(h, 0.0)
    return h


if __name__ == "__main__":
    key = jax.random.PRNGKey(0)
    k_params, k_x = jax.random.split(key)

    input_dim, hidden_dim, output_dim, num_layers = 16, 32, 8, 3
    batch, seq = 2, 8

    params = init_mlp_params(k_params, input_dim, hidden_dim, output_dim, num_layers)
    packed = prepare_params(params)   # pad + bf16-cast weights ONCE
    x = jax.random.normal(k_x, (batch, seq, input_dim), jnp.float32)

    out = jax.block_until_ready(mlp_forward(packed, x))
    assert out.shape == (batch, seq, output_dim)

    # Strict check vs a reference with the same bf16-matmul / f32-accum recipe.
    ref_bf16 = mlp_reference_bf16(params, x)
    assert jnp.allclose(out, ref_bf16, atol=2e-3, rtol=2e-3), \
        float(jnp.max(jnp.abs(out - ref_bf16)))

    # Semantic sanity check vs the full-f32 PyTorch-equivalent forward.
    ref_f32 = mlp_reference_f32(params, x)
    assert jnp.allclose(out, ref_f32, atol=5e-2, rtol=5e-2), \
        float(jnp.max(jnp.abs(out - ref_f32)))

    # Also exercise the weight-streaming fallback (used when the resident plan
    # would not fit VMEM, e.g. very wide layers on v7x's 64 MiB).
    out_fb = jax.block_until_ready(mlp_forward(packed, x, force_fallback=True))
    assert jnp.allclose(out_fb, ref_bf16, atol=2e-3, rtol=2e-3), \
        float(jnp.max(jnp.abs(out_fb - ref_bf16)))

    print("KERNEL_OK")
</pallas_src>

<mosaic_0001>
module attributes {stable_mosaic.version = 11 : i64} {
  func.func @_fused_mlp_kernel(%arg0: i32, %arg1: memref<16x128xf32, #tpu.memory_space<vmem>>, %arg2: memref<128x128xbf16, #tpu.memory_space<vmem>>, %arg3: memref<1x128xf32, #tpu.memory_space<vmem>>, %arg4: memref<128x128xbf16, #tpu.memory_space<vmem>>, %arg5: memref<1x128xf32, #tpu.memory_space<vmem>>, %arg6: memref<128x128xbf16, #tpu.memory_space<vmem>>, %arg7: memref<1x128xf32, #tpu.memory_space<vmem>>, %arg8: memref<16x128xf32, #tpu.memory_space<vmem>>) attributes {dimension_semantics = [#tpu.dimension_semantics<parallel>], iteration_bounds = array<i64: 1>, scalar_prefetch = 0 : i64, scratch_operands = 0 : i64, tpu.core_type = #tpu.core_type<tc>, window_params = [{transform_indices = @transform_0, window_bounds = array<i64: 16, 128>}, {pipeline_mode = #tpu.pipeline_mode<synchronous>, transform_indices = @transform_1, window_bounds = array<i64: 128, 128>}, {pipeline_mode = #tpu.pipeline_mode<synchronous>, transform_indices = @transform_2, window_bounds = array<i64: 1, 128>}, {pipeline_mode = #tpu.pipeline_mode<synchronous>, transform_indices = @transform_3, window_bounds = array<i64: 128, 128>}, {pipeline_mode = #tpu.pipeline_mode<synchronous>, transform_indices = @transform_4, window_bounds = array<i64: 1, 128>}, {pipeline_mode = #tpu.pipeline_mode<synchronous>, transform_indices = @transform_5, window_bounds = array<i64: 128, 128>}, {pipeline_mode = #tpu.pipeline_mode<synchronous>, transform_indices = @transform_6, window_bounds = array<i64: 1, 128>}, {transform_indices = @transform_7, window_bounds = array<i64: 16, 128>}]} {
    %c0 = arith.constant 0 : index
    %c0_0 = arith.constant 0 : index
    %0 = vector.load %arg1[%c0, %c0_0] : memref<16x128xf32, #tpu.memory_space<vmem>>, vector<16x128xf32>
    %1 = arith.truncf %0 : vector<16x128xf32> to vector<16x128xbf16>
    %c0_1 = arith.constant 0 : index
    %c0_2 = arith.constant 0 : index
    %2 = vector.load %arg2[%c0_1, %c0_2] : memref<128x128xbf16, #tpu.memory_space<vmem>>, vector<128x128xbf16>
    %c0_3 = arith.constant 0 : index
    %c0_4 = arith.constant 0 : index
    %3 = vector.load %arg3[%c0_3, %c0_4] : memref<1x128xf32, #tpu.memory_space<vmem>>, vector<1x128xf32>
    %cst = arith.constant dense<0.000000e+00> : vector<16x128xf32>
    %4 = tpu.matmul %1, %2, %cst {dimension_numbers = #tpu.dot_dimension_numbers<[1], [0], [0], [1], [0, 0, 1, 1], [], []>} : vector<16x128xbf16>, vector<128x128xbf16>, vector<16x128xf32> -> vector<16x128xf32>
    %5 = vector.broadcast %3 : vector<1x128xf32> to vector<16x128xf32>
    %6 = arith.addf %4, %5 : vector<16x128xf32>
    %cst_5 = arith.constant 0.000000e+00 : f32
    %7 = vector.broadcast %cst_5 : f32 to vector<16x128xf32>
    %8 = arith.maximumf %6, %7 : vector<16x128xf32>
    %9 = arith.truncf %8 : vector<16x128xf32> to vector<16x128xbf16>
    %c0_6 = arith.constant 0 : index
    %c0_7 = arith.constant 0 : index
    %10 = vector.load %arg4[%c0_6, %c0_7] : memref<128x128xbf16, #tpu.memory_space<vmem>>, vector<128x128xbf16>
    %c0_8 = arith.constant 0 : index
    %c0_9 = arith.constant 0 : index
    %11 = vector.load %arg5[%c0_8, %c0_9] : memref<1x128xf32, #tpu.memory_space<vmem>>, vector<1x128xf32>
    %cst_10 = arith.constant dense<0.000000e+00> : vector<16x128xf32>
    %12 = tpu.matmul %9, %10, %cst_10 {dimension_numbers = #tpu.dot_dimension_numbers<[1], [0], [0], [1], [0, 0, 1, 1], [], []>} : vector<16x128xbf16>, vector<128x128xbf16>, vector<16x128xf32> -> vector<16x128xf32>
    %13 = vector.broadcast %11 : vector<1x128xf32> to vector<16x128xf32>
    %14 = arith.addf %12, %13 : vector<16x128xf32>
    %cst_11 = arith.constant 0.000000e+00 : f32
    %15 = vector.broadcast %cst_11 : f32 to vector<16x128xf32>
    %16 = arith.maximumf %14, %15 : vector<16x128xf32>
    %17 = arith.truncf %16 : vector<16x128xf32> to vector<16x128xbf16>
    %c0_12 = arith.constant 0 : index
    %c0_13 = arith.constant 0 : index
    %18 = vector.load %arg6[%c0_12, %c0_13] : memref<128x128xbf16, #tpu.memory_space<vmem>>, vector<128x128xbf16>
    %c0_14 = arith.constant 0 : index
    %c0_15 = arith.constant 0 : index
    %19 = vector.load %arg7[%c0_14, %c0_15] : memref<1x128xf32, #tpu.memory_space<vmem>>, vector<1x128xf32>
    %cst_16 = arith.constant dense<0.000000e+00> : vector<16x128xf32>
    %20 = tpu.matmul %17, %18, %cst_16 {dimension_numbers = #tpu.dot_dimension_numbers<[1], [0], [0], [1], [0, 0, 1, 1], [], []>} : vector<16x128xbf16>, vector<128x128xbf16>, vector<16x128xf32> -> vector<16x128xf32>
    %21 = vector.broadcast %19 : vector<1x128xf32> to vector<16x128xf32>
    %22 = arith.addf %20, %21 : vector<16x128xf32>
    %c0_17 = arith.constant 0 : index
    %c0_18 = arith.constant 0 : index
    %23 = vector.load %arg8[%c0_17, %c0_18] : memref<16x128xf32, #tpu.memory_space<vmem>>, vector<16x128xf32>
    tpu.vector_store %arg8[%c0_17, %c0_18], %22 {strides = array<i32>} : memref<16x128xf32, #tpu.memory_space<vmem>>, vector<16x128xf32>,
    return
  }
  func.func @transform_0(%arg0: i32) -> (i32, i32) {
    %c0_i32 = arith.constant 0 : i32
    %c0_i32_0 = arith.constant 0 : i32
    return %arg0, %c0_i32 : i32, i32
  }
  func.func @transform_1(%arg0: i32) -> (i32, i32) {
    %c0_i32 = arith.constant 0 : i32
    %c0_i32_0 = arith.constant 0 : i32
    %c0_i32_1 = arith.constant 0 : i32
    return %c0_i32, %c0_i32_0 : i32, i32
  }
  func.func @transform_2(%arg0: i32) -> (i32, i32) {
    %c0_i32 = arith.constant 0 : i32
    %c0_i32_0 = arith.constant 0 : i32
    %c0_i32_1 = arith.constant 0 : i32
    return %c0_i32, %c0_i32_0 : i32, i32
  }
  func.func @transform_3(%arg0: i32) -> (i32, i32) {
    %c0_i32 = arith.constant 0 : i32
    %c0_i32_0 = arith.constant 0 : i32
    %c0_i32_1 = arith.constant 0 : i32
    return %c0_i32, %c0_i32_0 : i32, i32
  }
  func.func @transform_4(%arg0: i32) -> (i32, i32) {
    %c0_i32 = arith.constant 0 : i32
    %c0_i32_0 = arith.constant 0 : i32
    %c0_i32_1 = arith.constant 0 : i32
    return %c0_i32, %c0_i32_0 : i32, i32
  }
  func.func @transform_5(%arg0: i32) -> (i32, i32) {
    %c0_i32 = arith.constant 0 : i32
    %c0_i32_0 = arith.constant 0 : i32
    %c0_i32_1 = arith.constant 0 : i32
    return %c0_i32, %c0_i32_0 : i32, i32
  }
  func.func @transform_6(%arg0: i32) -> (i32, i32) {
    %c0_i32 = arith.constant 0 : i32
    %c0_i32_0 = arith.constant 0 : i32
    %c0_i32_1 = arith.constant 0 : i32
    return %c0_i32, %c0_i32_0 : i32, i32
  }
  func.func @transform_7(%arg0: i32) -> (i32, i32) {
    %c0_i32 = arith.constant 0 : i32
    %c0_i32_0 = arith.constant 0 : i32
    return %arg0, %c0_i32 : i32, i32
  }
}

module attributes {stable_mosaic.version = 11 : i64} {
  func.func @_fused_mlp_kernel(%arg0: i32, %arg1: memref<16x128xf32, #tpu.memory_space<vmem>>, %arg2: memref<128x128xbf16, #tpu.memory_space<vmem>>, %arg3: memref<1x128xf32, #tpu.memory_space<vmem>>, %arg4: memref<128x128xbf16, #tpu.memory_space<vmem>>, %arg5: memref<1x128xf32, #tpu.memory_space<vmem>>, %arg6: memref<128x128xbf16, #tpu.memory_space<vmem>>, %arg7: memref<1x128xf32, #tpu.memory_space<vmem>>, %arg8: memref<16x128xf32, #tpu.memory_space<vmem>>) attributes {dimension_semantics = [#tpu.dimension_semantics<parallel>], iteration_bounds = array<i64: 1>, scalar_prefetch = 0 : i64, scratch_operands = 0 : i64, tpu.core_type = #tpu.core_type<tc>, window_params = [{transform_indices = @transform_0, window_bounds = array<i64: 16, 128>}, {pipeline_mode = #tpu.pipeline_mode<synchronous>, transform_indices = @transform_1, window_bounds = array<i64: 128, 128>}, {pipeline_mode = #tpu.pipeline_mode<synchronous>, transform_indices = @transform_2, window_bounds = array<i64: 1, 128>}, {pipeline_mode = #tpu.pipeline_mode<synchronous>, transform_indices = @transform_3, window_bounds = array<i64: 128, 128>}, {pipeline_mode = #tpu.pipeline_mode<synchronous>, transform_indices = @transform_4, window_bounds = array<i64: 1, 128>}, {pipeline_mode = #tpu.pipeline_mode<synchronous>, transform_indices = @transform_5, window_bounds = array<i64: 128, 128>}, {pipeline_mode = #tpu.pipeline_mode<synchronous>, transform_indices = @transform_6, window_bounds = array<i64: 1, 128>}, {transform_indices = @transform_7, window_bounds = array<i64: 16, 128>}]} {
    %c0 = arith.constant 0 : index
    %c0_0 = arith.constant 0 : index
    %0 = vector.load %arg1[%c0, %c0_0] : memref<16x128xf32, #tpu.memory_space<vmem>>, vector<16x128xf32>
    %1 = arith.truncf %0 : vector<16x128xf32> to vector<16x128xbf16>
    %c0_1 = arith.constant 0 : index
    %c0_2 = arith.constant 0 : index
    %2 = vector.load %arg2[%c0_1, %c0_2] : memref<128x128xbf16, #tpu.memory_space<vmem>>, vector<128x128xbf16>
    %c0_3 = arith.constant 0 : index
    %c0_4 = arith.constant 0 : index
    %3 = vector.load %arg3[%c0_3, %c0_4] : memref<1x128xf32, #tpu.memory_space<vmem>>, vector<1x128xf32>
    %cst = arith.constant dense<0.000000e+00> : vector<16x128xf32>
    %4 = tpu.matmul %1, %2, %cst {dimension_numbers = #tpu.dot_dimension_numbers<[1], [0], [0], [1], [0, 0, 1, 1], [], []>} : vector<16x128xbf16>, vector<128x128xbf16>, vector<16x128xf32> -> vector<16x128xf32>
    %5 = vector.broadcast %3 : vector<1x128xf32> to vector<16x128xf32>
    %6 = arith.addf %4, %5 : vector<16x128xf32>
    %cst_5 = arith.constant 0.000000e+00 : f32
    %7 = vector.broadcast %cst_5 : f32 to vector<16x128xf32>
    %8 = arith.maximumf %6, %7 : vector<16x128xf32>
    %9 = arith.truncf %8 : vector<16x128xf32> to vector<16x128xbf16>
    %c0_6 = arith.constant 0 : index
    %c0_7 = arith.constant 0 : index
    %10 = vector.load %arg4[%c0_6, %c0_7] : memref<128x128xbf16, #tpu.memory_space<vmem>>, vector<128x128xbf16>
    %c0_8 = arith.constant 0 : index
    %c0_9 = arith.constant 0 : index
    %11 = vector.load %arg5[%c0_8, %c0_9] : memref<1x128xf32, #tpu.memory_space<vmem>>, vector<1x128xf32>
    %cst_10 = arith.constant dense<0.000000e+00> : vector<16x128xf32>
    %12 = tpu.matmul %9, %10, %cst_10 {dimension_numbers = #tpu.dot_dimension_numbers<[1], [0], [0], [1], [0, 0, 1, 1], [], []>} : vector<16x128xbf16>, vector<128x128xbf16>, vector<16x128xf32> -> vector<16x128xf32>
    %13 = vector.broadcast %11 : vector<1x128xf32> to vector<16x128xf32>
    %14 = arith.addf %12, %13 : vector<16x128xf32>
    %cst_11 = arith.constant 0.000000e+00 : f32
    %15 = vector.broadcast %cst_11 : f32 to vector<16x128xf32>
    %16 = arith.maximumf %14, %15 : vector<16x128xf32>
    %17 = arith.truncf %16 : vector<16x128xf32> to vector<16x128xbf16>
    %c0_12 = arith.constant 0 : index
    %c0_13 = arith.constant 0 : index
    %18 = vector.load %arg6[%c0_12, %c0_13] : memref<128x128xbf16, #tpu.memory_space<vmem>>, vector<128x128xbf16>
    %c0_14 = arith.constant 0 : index
    %c0_15 = arith.constant 0 : index
    %19 = vector.load %arg7[%c0_14, %c0_15] : memref<1x128xf32, #tpu.memory_space<vmem>>, vector<1x128xf32>
    %cst_16 = arith.constant dense<0.000000e+00> : vector<16x128xf32>
    %20 = tpu.matmul %17, %18, %cst_16 {dimension_numbers = #tpu.dot_dimension_numbers<[1], [0], [0], [1], [0, 0, 1, 1], [], []>} : vector<16x128xbf16>, vector<128x128xbf16>, vector<16x128xf32> -> vector<16x128xf32>
    %21 = vector.broadcast %19 : vector<1x128xf32> to vector<16x128xf32>
    %22 = arith.addf %20, %21 : vector<16x128xf32>
    %c0_17 = arith.constant 0 : index
    %c0_18 = arith.constant 0 : index
    %23 = vector.load %arg8[%c0_17, %c0_18] : memref<16x128xf32, #tpu.memory_space<vmem>>, vector<16x128xf32>
    tpu.vector_store %arg8[%c0_17, %c0_18], %22 {strides = array<i32>} : memref<16x128xf32, #tpu.memory_space<vmem>>, vector<16x128xf32>,
    return
  }
  func.func @transform_0(%arg0: i32) -> (i32, i32) {
    %c0_i32 = arith.constant 0 : i32
    %c0_i32_0 = arith.constant 0 : i32
    return %arg0, %c0_i32 : i32, i32
  }
  func.func @transform_1(%arg0: i32) -> (i32, i32) {
    %c0_i32 = arith.constant 0 : i32
    %c0_i32_0 = arith.constant 0 : i32
    %c0_i32_1 = arith.constant 0 : i32
    return %c0_i32, %c0_i32_0 : i32, i32
  }
  func.func @transform_2(%arg0: i32) -> (i32, i32) {
    %c0_i32 = arith.constant 0 : i32
    %c0_i32_0 = arith.constant 0 : i32
    %c0_i32_1 = arith.constant 0 : i32
    return %c0_i32, %c0_i32_0 : i32, i32
  }
  func.func @transform_3(%arg0: i32) -> (i32, i32) {
    %c0_i32 = arith.constant 0 : i32
    %c0_i32_0 = arith.constant 0 : i32
    %c0_i32_1 = arith.constant 0 : i32
    return %c0_i32, %c0_i32_0 : i32, i32
  }
  func.func @transform_4(%arg0: i32) -> (i32, i32) {
    %c0_i32 = arith.constant 0 : i32
    %c0_i32_0 = arith.constant 0 : i32
    %c0_i32_1 = arith.constant 0 : i32
    return %c0_i32, %c0_i32_0 : i32, i32
  }
  func.func @transform_5(%arg0: i32) -> (i32, i32) {
    %c0_i32 = arith.constant 0 : i32
    %c0_i32_0 = arith.constant 0 : i32
    %c0_i32_1 = arith.constant 0 : i32
    return %c0_i32, %c0_i32_0 : i32, i32
  }
  func.func @transform_6(%arg0: i32) -> (i32, i32) {
    %c0_i32 = arith.constant 0 : i32
    %c0_i32_0 = arith.constant 0 : i32
    %c0_i32_1 = arith.constant 0 : i32
    return %c0_i32, %c0_i32_0 : i32, i32
  }
  func.func @transform_7(%arg0: i32) -> (i32, i32) {
    %c0_i32 = arith.constant 0 : i32
    %c0_i32_0 = arith.constant 0 : i32
    return %arg0, %c0_i32 : i32, i32
  }
}

</mosaic_0001>

<bundles_post_ra>
// kernel: tpu_custom_call.1
= control target key start
LH: loop header
LB: loop body
LE: loop exit
PB: predicated region body
PF: predicated region fallthrough
CT: control target
= control target key end

     0   :  { %12 = vsyncpa [#allocation3], 0  ;;  %s707_s0 = inlined_call_operand.hbm [shape: f32[16,128], index: 0, kind: input, shape index: {}]   ;;  %s708_s1 = inlined_call_operand.hbm [shape: bf16[128,128], index: 1, kind: input, shape index: {}]   ;;  %s709_s2 = inlined_call_operand.vmem [shape: f32[1,128], index: 2, kind: input, shape index: {}]   ;;  %s710_s3 = inlined_call_operand.hbm [shape: bf16[128,128], index: 3, kind: input, shape index: {}]   ;;  %s711_s4 = inlined_call_operand.vmem [shape: f32[1,128], index: 4, kind: input, shape index: {}]   ;;  %s712_s5 = inlined_call_operand.hbm [shape: bf16[128,128], index: 5, kind: input, shape index: {}]   ;;  %s713_s6 = inlined_call_operand.vmem [shape: f32[1,128], index: 6, kind: input, shape index: {}]   ;;  %s714_s7 = inlined_call_operand.hbm [shape: f32[16,128], index: 7, kind: output, shape index: {}]  }
   0x1   :  { %13 = vsyncpa [#allocation6], 0 }
   0x2   :  { %14 = vsyncpa [#allocation9], 0  ;;  %s33_s26 = sshll.u32 %s708_s1, 4  ;;  %s34_s26 = int_to_ptr.hbm [resolvable:$true] %s33_s26 }
   0x3   :  { %15 = vsyncpa [#allocation4], 0  ;;  %s628_s27 = smov [#allocation5]   ;;  %s20_s8 = sshll.u32 %s707_s0, 4  ;;  %s21_s8 = int_to_ptr.hbm [resolvable:$true] %s20_s8 }
   0x4   :  { %s35_s28 = sshll.u32 %s628_s27, 4  ;;  %s629_s9 = smov 64   ;;  %s36_s28 = int_to_ptr.vmem [resolvable:$true] %s35_s28 }
   0x5   :  { %s630_s10 = smov 4   ;;  %s631_s11 = smov [#allocation2]  }
   0x6   :  { %41 = dma.hbm_to_vmem [thread:$0]  %s34_s26, 1024, %s36_s28, [#allocation6], %s629_s9, %s629_s9, %s630_s10  }
   0x7   :  { %s22_s12 = sshll.u32 %s631_s11, 4  ;;  %s632_s13 = smov 128   ;;  %s23_s12 = int_to_ptr.vmem [resolvable:$true] %s22_s12 }
   0x8   :  { %s633_s14 = smov 8   ;;  %s48_s16 = sshll.u32 %s710_s3, 4  ;;  %s49_s16 = int_to_ptr.hbm [resolvable:$true] %s48_s16 }
   0x9   :  { %28 = dma.hbm_to_vmem [thread:$0]  %s21_s8, 256, %s23_s12, [#allocation3], %s632_s13, %s632_s13, %s633_s14  }
   0xa   :  { %s634_s17 = smov [#allocation7]   ;;  %s63_s20 = sshll.u32 %s712_s5, 4  ;;  %s64_s20 = int_to_ptr.hbm [resolvable:$true] %s63_s20 }
   0xb   :  { %s50_s0 = sshll.u32 %s634_s17, 4  ;;  %s635_s21 = smov [#allocation8]   ;;  %s51_s0 = int_to_ptr.vmem [resolvable:$true] %s50_s0 }
   0xc   :  { %56 = dma.hbm_to_vmem [thread:$0]  %s49_s16, 1024, %s51_s0, [#allocation6], %s629_s9, %s629_s9, %s630_s10  }
   0xd   :  { %s65_s22 = sshll.u32 %s635_s21, 4  ;;  %s66_s22 = int_to_ptr.vmem [resolvable:$true] %s65_s22 }
   0xe   :  { %71 = dma.hbm_to_vmem [thread:$0]  %s64_s20, 1024, %s66_s22, [#allocation9], %s629_s9, %s629_s9, %s630_s10  }
   0xf   :  { %620 = dma.done.wait [#allocation3], 256  }
  0x10   :  { %621 = vsyncadd [#allocation3], 4294967040 }
  0x11   :  { %622 = dma.done.wait [#allocation6], 2048  }
  0x12   :  { %623 = vsyncadd [#allocation6], 4294965248 }
  0x13   :  { %624 = dma.done.wait [#allocation9], 1024  }
  0x14   :  { %625 = vsyncadd [#allocation9], 4294966272  ;;  %v471_v0 = vld [vmem:[#allocation5 + $0x38] sm:$0xff]  ;;  %v470_v1 = vld [vmem:[#allocation5 + $0x30] sm:$0xff]  ;;  %s636_s26 = smov [#allocation10]  }
  0x15   :  { %161 = vmatpush.bf16.msra.mxu0 %v471_v0  ;;  %v479_v2 = vld [vmem:[#allocation7 + $0x38] sm:$0xff]  ;;  %v478_v3 = vld [vmem:[#allocation7 + $0x30] sm:$0xff]  ;;  %v469_v4 = vld [vmem:[#allocation5 + $0x28] sm:$0xff]  ;;  %s351_s27 = sshll.u32 %s636_s26, 4  ;;  %s352_s27 = int_to_ptr.vmem [resolvable:$true] %s351_s27 }
  0x16   :  { %246 = vmatpush.bf16.msra.mxu1 %v479_v2  ;;  %v477_v5 = vld [vmem:[#allocation7 + $0x28] sm:$0xff]  ;;  %v468_v6 = vld [vmem:[#allocation5 + $0x20] sm:$0xff]  ;;  %v467_v8 = vld [vmem:[#allocation5 + $0x18] sm:$0xff] }
  0x17   :  { %v476_v7 = vld [vmem:[#allocation7 + $0x20] sm:$0xff]  ;;  %v466_v9 = vld [vmem:[#allocation5 + $0x10] sm:$0xff]  ;;  %v465_v10 = vld [vmem:[#allocation5 + $0x8] sm:$0xff] }
  0x18   :  { %v464_v11 = vld [vmem:[#allocation5] sm:$0xff]  ;;  %v90_v12 = vld [vmem:[#allocation2] sm:$0xff]  ;;  %v91_v13 = vld [vmem:[#allocation2 + $0x8] sm:$0xff] }
  0x19   :  { %162 = vmatpush.bf16.msra.mxu0 %v470_v1  ;;  %v92_v14 = vpack.c.bf16 %v91_v13, %v90_v12  ;;  %v475_v15 = vld [vmem:[#allocation7 + $0x18] sm:$0xff]  ;;  %v474_v16 = vld [vmem:[#allocation7 + $0x10] sm:$0xff]  ;;  %v473_v17 = vld [vmem:[#allocation7 + $0x8] sm:$0xff] }
  0x1a   :  { %247 = vmatpush.bf16.msra.mxu1 %v478_v3  ;;  %v472_v18 = vld [vmem:[#allocation7] sm:$0xff]  ;;  %v487_v19 = vld [vmem:[#allocation8 + $0x38] sm:$0xff]  ;;  %v486_v20 = vld [vmem:[#allocation8 + $0x30] sm:$0xff] }
  0x1b   :  { %331 = vmatpush.bf16.msra.mxu2 %v487_v19  ;;  %v485_v21 = vld [vmem:[#allocation8 + $0x28] sm:$0xff]  ;;  %v484_v22 = vld [vmem:[#allocation8 + $0x20] sm:$0xff]  ;;  %v497_v24 = vld [vmem:[%s709_s2] ss:$0 sm:$0xff] }
  0x1c   :  { %v483_v31 = vld [vmem:[#allocation8 + $0x18] sm:$0xff]  ;;  %v482_v32 = vld [vmem:[#allocation8 + $0x10] sm:$0xff]  ;;  %v481_v33 = vld [vmem:[#allocation8 + $0x8] sm:$0xff] }
  0x1d   :  { %163 = vmatpush.bf16.msra.mxu0 %v469_v4  ;;  %v480_v34 = vld [vmem:[#allocation8] sm:$0xff]  ;;  %v498_v36 = vld [vmem:[%s711_s4] ss:$0 sm:$0xff]  ;;  %s353_s4 = sshll.u32 %s714_s7, 4  ;;  %s354_s4 = int_to_ptr.hbm [resolvable:$true] %s353_s4 }
  0x1e   :  { %248 = vmatpush.bf16.msra.mxu1 %v477_v5  ;;  %v499_v43 = vld [vmem:[%s713_s6] ss:$0 sm:$0xff] }
  0x1f   :  { %332 = vmatpush.bf16.msra.mxu2 %v486_v20 }
  0x21   :  { %164 = vmatpush.bf16.msra.mxu0 %v468_v6 }
  0x22   :  { %249 = vmatpush.bf16.msra.mxu1 %v476_v7 }
  0x23   :  { %333 = vmatpush.bf16.msra.mxu2 %v485_v21 }
  0x25   :  { %165 = vmatpush.bf16.msra.mxu0 %v467_v8 }
  0x26   :  { %250 = vmatpush.bf16.msra.mxu1 %v475_v15 }
  0x27   :  { %334 = vmatpush.bf16.msra.mxu2 %v484_v22 }
  0x29   :  { %166 = vmatpush.bf16.msra.mxu0 %v466_v9 }
  0x2a   :  { %251 = vmatpush.bf16.msra.mxu1 %v474_v16 }
  0x2b   :  { %335 = vmatpush.bf16.msra.mxu2 %v483_v31 }
  0x2d   :  { %167 = vmatpush.bf16.msra.mxu0 %v465_v10 }
  0x2e   :  { %252 = vmatpush.bf16.msra.mxu1 %v473_v17 }
  0x2f   :  { %336 = vmatpush.bf16.msra.mxu2 %v482_v32 }
  0x31   :  { %168 = vmatpush.bf16.msra.mxu0 %v464_v11 }
  0x32   :  { %253 = vmatpush.bf16.msra.mxu1 %v472_v18 }
  0x33   :  { %337 = vmatpush.bf16.msra.mxu2 %v481_v33 }
  0x34   :  { %169 = vmatmul.bf16.vlgmr.msra.gmra.mxu0 %v92_v14 }
  0x37   :  { %338 = vmatpush.bf16.msra.mxu2 %v480_v34 }
  0xb1   :  { %v170_v23 = vpop.f32.mrf.mxu0 }
  0xb2   :  { %v171_v25 = vadd.f32 %v497_v24, %v170_v23 }
  0xb4   :  { %v175_v28 = vmax.f32 %v171_v25, 0.0 }
  0xb9   :  { %v172_v26 = vpop.f32.mrf.mxu0 }
  0xba   :  { %v173_v27 = vadd.f32 %v497_v24, %v172_v26 }
  0xbc   :  { %v176_v29 = vmax.f32 %v173_v27, 0.0 }
  0xbe   :  { %v177_v30 = vpack.c.bf16 %v176_v29, %v175_v28 }
  0xc0   :  { %254 = vmatmul.bf16.vlgmr.msra.gmra.mxu1 %v177_v30 }
 0x13d   :  { %v255_v35 = vpop.f32.mrf.mxu1 }
 0x13e   :  { %v256_v37 = vadd.f32 %v498_v36, %v255_v35 }
 0x140   :  { %v260_v40 = vmax.f32 %v256_v37, 0.0 }
 0x145   :  { %v257_v38 = vpop.f32.mrf.mxu1 }
 0x146   :  { %v258_v39 = vadd.f32 %v498_v36, %v257_v38 }
 0x148   :  { %v261_v41 = vmax.f32 %v258_v39, 0.0 }
 0x14a   :  { %v262_v42 = vpack.c.bf16 %v261_v41, %v260_v40 }
 0x14c   :  { %339 = vmatmul.bf16.vlgmr.msra.gmra.mxu2 %v262_v42 }
 0x1cf   :  { %v340_v44 = vpop.f32.mrf.mxu2 }
 0x1d0   :  { %v341_v45 = vadd.f32 %v499_v43, %v340_v44 }
 0x1d2   :  { %345 = vst [vmem:[#allocation10] sm:$0xff] %v341_v45 }
 0x1d7   :  { %v342_v46 = vpop.f32.mrf.mxu2 }
 0x1d8   :  { %v343_v47 = vadd.f32 %v499_v43, %v342_v46 }
 0x1da   :  { %346 = vst [vmem:[#allocation10 + $0x8] sm:$0xff] %v343_v47 }
 0x1db   :  { %359 = dma.vmem_to_hbm [thread:$0]  %s352_s27, 256, %s354_s4, [#allocation4], %s632_s13, %s632_s13, %s633_s14  }
 0x1dc   :  { %626 = dma.done.wait [#allocation4], 256  }
 0x1dd   :  { %627 = vsyncadd [#allocation4], 4294967040 }
 0x1de   :  { %364 = vsyncpa [#allocation3], 1 }
 0x1df   :  { %365 = vsyncpa [#allocation6], 1 }
 0x1e0   :  { %366 = vsyncpa [#allocation9], 1 }
 0x1e1   :  { %367 = vsyncpa [#allocation4], 1 }

// kernel: tpu_custom_call.1
= control target key start
LH: loop header
LB: loop body
LE: loop exit
PB: predicated region body
PF: predicated region fallthrough
CT: control target
= control target key end

     0   :  { %12 = vsyncpa [#allocation3], 0  ;;  %s707_s0 = inlined_call_operand.hbm [shape: f32[16,128], index: 0, kind: input, shape index: {}]   ;;  %s708_s1 = inlined_call_operand.hbm [shape: bf16[128,128], index: 1, kind: input, shape index: {}]   ;;  %s709_s2 = inlined_call_operand.vmem [shape: f32[1,128], index: 2, kind: input, shape index: {}]   ;;  %s710_s3 = inlined_call_operand.hbm [shape: bf16[128,128], index: 3, kind: input, shape index: {}]   ;;  %s711_s4 = inlined_call_operand.vmem [shape: f32[1,128], index: 4, kind: input, shape index: {}]   ;;  %s712_s5 = inlined_call_operand.hbm [shape: bf16[128,128], index: 5, kind: input, shape index: {}]   ;;  %s713_s6 = inlined_call_operand.vmem [shape: f32[1,128], index: 6, kind: input, shape index: {}]   ;;  %s714_s7 = inlined_call_operand.hbm [shape: f32[16,128], index: 7, kind: output, shape index: {}]  }
   0x1   :  { %13 = vsyncpa [#allocation6], 0 }
   0x2   :  { %14 = vsyncpa [#allocation9], 0  ;;  %s33_s26 = sshll.u32 %s708_s1, 4  ;;  %s34_s26 = int_to_ptr.hbm [resolvable:$true] %s33_s26 }
   0x3   :  { %15 = vsyncpa [#allocation4], 0  ;;  %s628_s27 = smov [#allocation5]   ;;  %s20_s8 = sshll.u32 %s707_s0, 4  ;;  %s21_s8 = int_to_ptr.hbm [resolvable:$true] %s20_s8 }
   0x4   :  { %s35_s28 = sshll.u32 %s628_s27, 4  ;;  %s629_s9 = smov 64   ;;  %s36_s28 = int_to_ptr.vmem [resolvable:$true] %s35_s28 }
   0x5   :  { %s630_s10 = smov 4   ;;  %s631_s11 = smov [#allocation2]  }
   0x6   :  { %41 = dma.hbm_to_vmem [thread:$0]  %s34_s26, 1024, %s36_s28, [#allocation6], %s629_s9, %s629_s9, %s630_s10  }
   0x7   :  { %s22_s12 = sshll.u32 %s631_s11, 4  ;;  %s632_s13 = smov 128   ;;  %s23_s12 = int_to_ptr.vmem [resolvable:$true] %s22_s12 }
   0x8   :  { %s633_s14 = smov 8   ;;  %s48_s16 = sshll.u32 %s710_s3, 4  ;;  %s49_s16 = int_to_ptr.hbm [resolvable:$true] %s48_s16 }
   0x9   :  { %28 = dma.hbm_to_vmem [thread:$0]  %s21_s8, 256, %s23_s12, [#allocation3], %s632_s13, %s632_s13, %s633_s14  }
   0xa   :  { %s634_s17 = smov [#allocation7]   ;;  %s63_s20 = sshll.u32 %s712_s5, 4  ;;  %s64_s20 = int_to_ptr.hbm [resolvable:$true] %s63_s20 }
   0xb   :  { %s50_s0 = sshll.u32 %s634_s17, 4  ;;  %s635_s21 = smov [#allocation8]   ;;  %s51_s0 = int_to_ptr.vmem [resolvable:$true] %s50_s0 }
   0xc   :  { %56 = dma.hbm_to_vmem [thread:$0]  %s49_s16, 1024, %s51_s0, [#allocation6], %s629_s9, %s629_s9, %s630_s10  }
   0xd   :  { %s65_s22 = sshll.u32 %s635_s21, 4  ;;  %s66_s22 = int_to_ptr.vmem [resolvable:$true] %s65_s22 }
   0xe   :  { %71 = dma.hbm_to_vmem [thread:$0]  %s64_s20, 1024, %s66_s22, [#allocation9], %s629_s9, %s629_s9, %s630_s10  }
   0xf   :  { %620 = dma.done.wait [#allocation3], 256  }
  0x10   :  { %621 = vsyncadd [#allocation3], 4294967040 }
  0x11   :  { %622 = dma.done.wait [#allocation6], 2048  }
  0x12   :  { %623 = vsyncadd [#allocation6], 4294965248 }
  0x13   :  { %624 = dma.done.wait [#allocation9], 1024  }
  0x14   :  { %625 = vsyncadd [#allocation9], 4294966272  ;;  %v471_v0 = vld [vmem:[#allocation5 + $0x38] sm:$0xff]  ;;  %v470_v1 = vld [vmem:[#allocation5 + $0x30] sm:$0xff]  ;;  %s636_s26 = smov [#allocation10]  }
  0x15   :  { %161 = vmatpush.bf16.msra.mxu0 %v471_v0  ;;  %v479_v2 = vld [vmem:[#allocation7 + $0x38] sm:$0xff]  ;;  %v478_v3 = vld [vmem:[#allocation7 + $0x30] sm:$0xff]  ;;  %v469_v4 = vld [vmem:[#allocation5 + $0x28] sm:$0xff]  ;;  %s351_s27 = sshll.u32 %s636_s26, 4  ;;  %s352_s27 = int_to_ptr.vmem [resolvable:$true] %s351_s27 }
  0x16   :  { %246 = vmatpush.bf16.msra.mxu1 %v479_v2  ;;  %v477_v5 = vld [vmem:[#allocation7 + $0x28] sm:$0xff]  ;;  %v468_v6 = vld [vmem:[#allocation5 + $0x20] sm:$0xff]  ;;  %v467_v8 = vld [vmem:[#allocation5 + $0x18] sm:$0xff] }
  0x17   :  { %v476_v7 = vld [vmem:[#allocation7 + $0x20] sm:$0xff]  ;;  %v466_v9 = vld [vmem:[#allocation5 + $0x10] sm:$0xff]  ;;  %v465_v10 = vld [vmem:[#allocation5 + $0x8] sm:$0xff] }
  0x18   :  { %v464_v11 = vld [vmem:[#allocation5] sm:$0xff]  ;;  %v90_v12 = vld [vmem:[#allocation2] sm:$0xff]  ;;  %v91_v13 = vld [vmem:[#allocation2 + $0x8] sm:$0xff] }
  0x19   :  { %162 = vmatpush.bf16.msra.mxu0 %v470_v1  ;;  %v92_v14 = vpack.c.bf16 %v91_v13, %v90_v12  ;;  %v475_v15 = vld [vmem:[#allocation7 + $0x18] sm:$0xff]  ;;  %v474_v16 = vld [vmem:[#allocation7 + $0x10] sm:$0xff]  ;;  %v473_v17 = vld [vmem:[#allocation7 + $0x8] sm:$0xff] }
  0x1a   :  { %247 = vmatpush.bf16.msra.mxu1 %v478_v3  ;;  %v472_v18 = vld [vmem:[#allocation7] sm:$0xff]  ;;  %v487_v19 = vld [vmem:[#allocation8 + $0x38] sm:$0xff]  ;;  %v486_v20 = vld [vmem:[#allocation8 + $0x30] sm:$0xff] }
  0x1b   :  { %331 = vmatpush.bf16.msra.mxu2 %v487_v19  ;;  %v485_v21 = vld [vmem:[#allocation8 + $0x28] sm:$0xff]  ;;  %v484_v22 = vld [vmem:[#allocation8 + $0x20] sm:$0xff]  ;;  %v497_v24 = vld [vmem:[%s709_s2] ss:$0 sm:$0xff] }
  0x1c   :  { %v483_v31 = vld [vmem:[#allocation8 + $0x18] sm:$0xff]  ;;  %v482_v32 = vld [vmem:[#allocation8 + $0x10] sm:$0xff]  ;;  %v481_v33 = vld [vmem:[#allocation8 + $0x8] sm:$0xff] }
  0x1d   :  { %163 = vmatpush.bf16.msra.mxu0 %v469_v4  ;;  %v480_v34 = vld [vmem:[#allocation8] sm:$0xff]  ;;  %v498_v36 = vld [vmem:[%s711_s4] ss:$0 sm:$0xff]  ;;  %s353_s4 = sshll.u32 %s714_s7, 4  ;;  %s354_s4 = int_to_ptr.hbm [resolvable:$true] %s353_s4 }
  0x1e   :  { %248 = vmatpush.bf16.msra.mxu1 %v477_v5  ;;  %v499_v43 = vld [vmem:[%s713_s6] ss:$0 sm:$0xff] }
  0x1f   :  { %332 = vmatpush.bf16.msra.mxu2 %v486_v20 }
  0x21   :  { %164 = vmatpush.bf16.msra.mxu0 %v468_v6 }
  0x22   :  { %249 = vmatpush.bf16.msra.mxu1 %v476_v7 }
  0x23   :  { %333 = vmatpush.bf16.msra.mxu2 %v485_v21 }
  0x25   :  { %165 = vmatpush.bf16.msra.mxu0 %v467_v8 }
  0x26   :  { %250 = vmatpush.bf16.msra.mxu1 %v475_v15 }
  0x27   :  { %334 = vmatpush.bf16.msra.mxu2 %v484_v22 }
  0x29   :  { %166 = vmatpush.bf16.msra.mxu0 %v466_v9 }
  0x2a   :  { %251 = vmatpush.bf16.msra.mxu1 %v474_v16 }
  0x2b   :  { %335 = vmatpush.bf16.msra.mxu2 %v483_v31 }
  0x2d   :  { %167 = vmatpush.bf16.msra.mxu0 %v465_v10 }
  0x2e   :  { %252 = vmatpush.bf16.msra.mxu1 %v473_v17 }
  0x2f   :  { %336 = vmatpush.bf16.msra.mxu2 %v482_v32 }
  0x31   :  { %168 = vmatpush.bf16.msra.mxu0 %v464_v11 }
  0x32   :  { %253 = vmatpush.bf16.msra.mxu1 %v472_v18 }
  0x33   :  { %337 = vmatpush.bf16.msra.mxu2 %v481_v33 }
  0x34   :  { %169 = vmatmul.bf16.vlgmr.msra.gmra.mxu0 %v92_v14 }
  0x37   :  { %338 = vmatpush.bf16.msra.mxu2 %v480_v34 }
  0xb1   :  { %v170_v23 = vpop.f32.mrf.mxu0 }
  0xb2   :  { %v171_v25 = vadd.f32 %v497_v24, %v170_v23 }
  0xb4   :  { %v175_v28 = vmax.f32 %v171_v25, 0.0 }
  0xb9   :  { %v172_v26 = vpop.f32.mrf.mxu0 }
  0xba   :  { %v173_v27 = vadd.f32 %v497_v24, %v172_v26 }
  0xbc   :  { %v176_v29 = vmax.f32 %v173_v27, 0.0 }
  0xbe   :  { %v177_v30 = vpack.c.bf16 %v176_v29, %v175_v28 }
  0xc0   :  { %254 = vmatmul.bf16.vlgmr.msra.gmra.mxu1 %v177_v30 }
 0x13d   :  { %v255_v35 = vpop.f32.mrf.mxu1 }
 0x13e   :  { %v256_v37 = vadd.f32 %v498_v36, %v255_v35 }
 0x140   :  { %v260_v40 = vmax.f32 %v256_v37, 0.0 }
 0x145   :  { %v257_v38 = vpop.f32.mrf.mxu1 }
 0x146   :  { %v258_v39 = vadd.f32 %v498_v36, %v257_v38 }
 0x148   :  { %v261_v41 = vmax.f32 %v258_v39, 0.0 }
 0x14a   :  { %v262_v42 = vpack.c.bf16 %v261_v41, %v260_v40 }
 0x14c   :  { %339 = vmatmul.bf16.vlgmr.msra.gmra.mxu2 %v262_v42 }
 0x1cf   :  { %v340_v44 = vpop.f32.mrf.mxu2 }
 0x1d0   :  { %v341_v45 = vadd.f32 %v499_v43, %v340_v44 }
 0x1d2   :  { %345 = vst [vmem:[#allocation10] sm:$0xff] %v341_v45 }
 0x1d7   :  { %v342_v46 = vpop.f32.mrf.mxu2 }
 0x1d8   :  { %v343_v47 = vadd.f32 %v499_v43, %v342_v46 }
 0x1da   :  { %346 = vst [vmem:[#allocation10 + $0x8] sm:$0xff] %v343_v47 }
 0x1db   :  { %359 = dma.vmem_to_hbm [thread:$0]  %s352_s27, 256, %s354_s4, [#allocation4], %s632_s13, %s632_s13, %s633_s14  }
 0x1dc   :  { %626 = dma.done.wait [#allocation4], 256  }
 0x1dd   :  { %627 = vsyncadd [#allocation4], 4294967040 }
 0x1de   :  { %364 = vsyncpa [#allocation3], 1 }
 0x1df   :  { %365 = vsyncpa [#allocation6], 1 }
 0x1e0   :  { %366 = vsyncpa [#allocation9], 1 }
 0x1e1   :  { %367 = vsyncpa [#allocation4], 1 }

</bundles_post_ra>
